<compile_context>
chip_gen: v5e
topology: v5e:2x2
jax: 0.10.0
libtpu: 0.0.40
codegen_flags: <defaults>
</compile_context>

<pallas_src>
import numpy as np
import jax
import jax.numpy as jnp
from jax.experimental import pallas as pl
from jax.experimental.pallas import tpu as pltpu


def _round_up(x, m):
    return ((x + m - 1) // m) * m


def _l_mat_kernel(x_ref, c_ref, l_ref):
    # x_ref: (bt, N, D)  f32  sentence vectors (unpadded rows)
    # c_ref: (bt, N, 1)  f32  per-row coefficient: logit where mask else NaN
    # l_ref: (bt, N, Nc) f32  DPP kernel matrices, Nc = round_up(N, 128)
    x = x_ref[...]
    c = c_ref[...]
    n = x.shape[1]
    nc = l_ref.shape[2]

    # Row norms over the hidden axis (lane reduction, XLU).
    sq = jnp.sum(x * x, axis=-1, keepdims=True)               # (bt, N, 1)
    # Exact f32 rsqrt on the EUP. rsqrt(0)=inf; coef*inf or NaN coef -> NaN
    # rows, reproducing torch's 0/0 NaN rows for masked / all-zero sentences.
    scale = c * jax.lax.rsqrt(sq)                              # (bt, N, 1) f32
    y = x * scale                                              # (bt, N, D) f32

    # Lane-dense columns: zero rows appended in VMEM only (never touch HBM).
    if nc == n:
        y_cols = y
    else:
        pad = jnp.zeros((y.shape[0], nc - n, y.shape[2]), y.dtype)
        y_cols = jnp.concatenate([y, pad], axis=1)             # (bt, Nc, D)

    # bf16 MXU operands; y_rhs[:, :N, :] is bit-identical to y_lhs, so the
    # valid NxN block of the single Gram matmul is exactly symmetric and the
    # reference's 0.5*(L + L^T) is a no-op.
    y_lhs = y.astype(jnp.bfloat16)
    y_rhs = y_cols.astype(jnp.bfloat16)

    l_ref[...] = jnp.einsum("bnd,bmd->bnm", y_lhs, y_rhs,
                            preferred_element_type=jnp.float32)


def _vmem_config():
    """Returns (tile_budget_bytes, vmem_limit_bytes, two_tensorcores)."""
    cap = 0
    try:
        info = pltpu.get_tpu_info()
        cap = int(getattr(info, "vmem_capacity_bytes", 0) or 0)
    except Exception:
        cap = 0
    if cap >= 100 * 1024 * 1024:
        # v5e / v6e: 128 MiB VMEM, single TensorCore.
        return 96 * 1024 * 1024, 112 * 1024 * 1024, False
    # v7x (64 MiB per TC, 2 TCs) or unknown: stay conservative.
    return 32 * 1024 * 1024, 48 * 1024 * 1024, True


def compute_l_mat(sents_vec, logit_pred, mask_cls):
    """Pallas hot path.

    Returns L matrices of shape (B, N, Nc) float32 with Nc = round_up(N, 128);
    the caller slices [:, :, :N] (on device) before using them.
    """
    B, N, D = sents_vec.shape
    Nc = _round_up(max(N, 1), 128)                 # lane-dense output columns

    x = jnp.asarray(sents_vec, jnp.float32)
    lg = jnp.asarray(logit_pred, jnp.float32).reshape(B, N)
    m = jnp.asarray(mask_cls).astype(bool).reshape(B, N)

    # Fold mask into the logit coefficient (tiny (B, N) op): masked rows ->
    # NaN rows/cols in L, exactly like torch's 0/0 division.  The large x
    # tensor is passed unpadded -> no extra HBM traffic.
    coef = jnp.where(m, lg, jnp.float32(jnp.nan))[:, :, None]  # (B, N, 1)

    # --- choose the batch tile bt against the generation-specific budget -----
    budget, vmem_limit, two_cores = _vmem_config()
    io_bytes = 4 * (N * D + N + N * Nc)             # f32 in + out, per example
    tmp_bytes = 6 * N * D + 2 * Nc * D + 4 * N * Nc  # y f32+bf16, y_rhs, acc
    bt = max(1, budget // (2 * io_bytes + tmp_bytes))  # x2: double-buffered IO
    if two_cores and B >= 2:
        bt = min(bt, pl.cdiv(B, 2))                 # >= 2 steps for 2 TCs (v7x)
    bt = int(max(1, min(bt, B)))
    grid = (pl.cdiv(B, bt),)                        # ragged tail handled by Pallas

    cost = pl.CostEstimate(
        flops=2 * B * N * Nc * D,
        transcendentals=B * N,
        bytes_accessed=B * io_bytes,
    )

    # NOTE: "parallel" is codegen-neutral on 1-TC chips; if profiling shows one
    # v7x TensorCore idle, switch this axis to pltpu.CORE_PARALLEL.
    return pl.pallas_call(
        _l_mat_kernel,
        out_shape=jax.ShapeDtypeStruct((B, N, Nc), jnp.float32),
        grid_spec=pltpu.PrefetchScalarGridSpec(
            num_scalar_prefetch=0,
            grid=grid,
            in_specs=[
                pl.BlockSpec((bt, N, D), lambda b: (b, 0, 0)),
                pl.BlockSpec((bt, N, 1), lambda b: (b, 0, 0)),
            ],
            out_specs=pl.BlockSpec((bt, N, Nc), lambda b: (b, 0, 0)),
        ),
        compiler_params=pltpu.CompilerParams(
            dimension_semantics=("parallel",),
            vmem_limit_bytes=vmem_limit,
        ),
        cost_estimate=cost,
    )(x, coef)


def _torch_like_logdet(mat):
    """Replicates torch.logdet: NaN for NaN input or negative det, -inf for det==0."""
    if np.isnan(mat).any():
        return float("nan")
    sign, lad = np.linalg.slogdet(mat)
    if sign > 0:
        return float(lad)
    if sign == 0:
        return float("-inf")
    return float("nan")


class DPP:
    """JAX/Pallas port of the PyTorch DPP loss module (forward only)."""

    def __init__(self, dpp_weight=1.0, is_seg_label_1st_sent=False):
        self.dpp_weight = dpp_weight
        self.is_seg_label_1st_sent = is_seg_label_1st_sent

    def __call__(self, sents_vec, logit_pred, mask_cls,
                 sent_sum_labels, sent_seg_labels):
        B, N, _ = sents_vec.shape

        # --- Pallas kernel: build the batched DPP L matrices -----------------
        L_full = compute_l_mat(sents_vec, logit_pred, mask_cls)   # (B, N, Nc)
        # Slice off the lane padding ON DEVICE before the PCIe transfer.
        L_dev = jax.block_until_ready(L_full[:, :, :N])
        L_np = np.asarray(jax.device_get(L_dev))                  # (B, N, N)

        mask_np = np.asarray(mask_cls).astype(bool).reshape(B, N)
        sum_np = np.asarray(sent_sum_labels)
        seg_np = np.asarray(sent_seg_labels)

        # --- host-side glue (mirrors the PyTorch Python loop) ----------------
        # TODO(synk): eigh / logdet and the variable-size label gathers have no
        # Pallas TPU equivalent; they run host-side with numpy.
        l_mat_mask = np.array(
            [not np.isnan(_torch_like_logdet(L_np[i])) for i in range(B)])

        recon = {}
        for i in range(B):
            if not l_mat_mask[i]:
                continue
            e, v = np.linalg.eigh(L_np[i])
            e = np.where(e < 0, 0.0, e)                 # e_l[e_l < 0] = 0
            recon[i] = v @ np.diag(e) @ v.T

        def cvt_bin_to_pos_(labels, target_val=1):
            return [[j for j, l in enumerate(row) if l == target_val]
                    for row in labels]

        sum_labels = cvt_bin_to_pos_(sum_np)
        seg_labels = cvt_bin_to_pos_(seg_np)

        batch_loss = []
        for i in range(B):
            if not l_mat_mask[i]:
                continue
            mat = recon[i]
            sum_label = sum_labels[i]
            seg_label = seg_labels[i]
            if not self.is_seg_label_1st_sent:
                # NOTE: matches PyTorch exactly; seg_label never feeds the loss.
                last_sent_id = next(
                    (mi for mi, mk in enumerate(mask_np[i]) if not mk),
                    len(mask_np[i]))
                if seg_label and seg_label[-1] + 1 < last_sent_id:
                    seg_label.append(last_sent_id - 1)
            keep = (mat != 0).any(0)
            L = mat[keep][:, keep]
            Ly = L[sum_label, :][:, sum_label]
            loss = (-_torch_like_logdet(Ly)
                    + _torch_like_logdet(L + np.eye(L.shape[0])))
            batch_loss.append(loss)

        if batch_loss:
            arr = np.asarray(batch_loss, dtype=np.float32)
            arr = np.where(np.isnan(arr), 0.0, arr)     # NaN -> 0
            loss_dpp = float(arr.mean())
        else:
            loss_dpp = float("nan")                     # torch: mean of empty = nan

        return {"loss_dpp": loss_dpp * self.dpp_weight}


if __name__ == "__main__":
    key = jax.random.PRNGKey(0)
    B, N, D = 2, 8, 32
    k1, k2 = jax.random.split(key)

    sents_vec = jax.random.normal(k1, (B, N, D), dtype=jnp.float32)
    logit_pred = jax.nn.sigmoid(jax.random.normal(k2, (B, N), dtype=jnp.float32))

    mask = np.ones((B, N), dtype=bool)
    mask[1, -2:] = False        # batch 1 gets NaN rows -> dropped by logdet mask
    mask_cls = jnp.asarray(mask)

    sum_labels = np.zeros((B, N), dtype=np.int32)
    sum_labels[:, [0, 3]] = 1
    seg_labels = np.zeros((B, N), dtype=np.int32)
    seg_labels[:, [2, 5]] = 1

    # Run the Pallas kernel once and block on the result.
    L_demo = compute_l_mat(sents_vec, logit_pred, mask_cls)
    jax.block_until_ready(L_demo)

    # Full forward pass (kernel + host-side logdet glue).
    module = DPP(dpp_weight=1.0, is_seg_label_1st_sent=False)
    out = module(sents_vec, logit_pred, mask_cls,
                 jnp.asarray(sum_labels), jnp.asarray(seg_labels))
    _ = out["loss_dpp"]
    print("KERNEL_OK")
</pallas_src>

<mosaic_0001>
module attributes {stable_mosaic.version = 11 : i64} {
  func.func @_l_mat_kernel(%arg0: i32, %arg1: memref<1x8x32xf32, #tpu.memory_space<vmem>>, %arg2: memref<1x8x1xf32, #tpu.memory_space<vmem>>, %arg3: memref<1x8x128xf32, #tpu.memory_space<vmem>>) attributes {dimension_semantics = [#tpu.dimension_semantics<parallel>], iteration_bounds = array<i64: 2>, scalar_prefetch = 0 : i64, scratch_operands = 0 : i64, tpu.core_type = #tpu.core_type<tc>, window_params = [{transform_indices = @transform_0, window_bounds = array<i64: 1, 8, 32>}, {transform_indices = @transform_1, window_bounds = array<i64: 1, 8, 1>}, {transform_indices = @transform_2, window_bounds = array<i64: 1, 8, 128>}]} {
    %c0 = arith.constant 0 : index
    %c0_0 = arith.constant 0 : index
    %c0_1 = arith.constant 0 : index
    %0 = vector.load %arg1[%c0, %c0_0, %c0_1] : memref<1x8x32xf32, #tpu.memory_space<vmem>>, vector<1x8x32xf32>
    %c0_2 = arith.constant 0 : index
    %c0_3 = arith.constant 0 : index
    %c0_4 = arith.constant 0 : index
    %1 = vector.load %arg2[%c0_2, %c0_3, %c0_4] : memref<1x8x1xf32, #tpu.memory_space<vmem>>, vector<1x8x1xf32>
    %2 = arith.mulf %0, %0 : vector<1x8x32xf32>
    %cst = arith.constant dense<0.000000e+00> : vector<1x8xf32>
    %3 = vector.multi_reduction <add>, %2, %cst [2] : vector<1x8x32xf32> to vector<1x8xf32>
    %4 = vector.shape_cast %3 : vector<1x8xf32> to vector<1x8x1xf32>
    %5 = math.rsqrt %4 : vector<1x8x1xf32>
    %6 = arith.mulf %1, %5 : vector<1x8x1xf32>
    %7 = vector.broadcast %6 : vector<1x8x1xf32> to vector<1x8x32xf32>
    %8 = arith.mulf %0, %7 : vector<1x8x32xf32>
    %cst_5 = arith.constant 0.000000e+00 : f32
    %9 = vector.broadcast %cst_5 : f32 to vector<1x120x32xf32>
    %10 = tpu.concatenate %8, %9 in 1 : vector<1x8x32xf32>, vector<1x120x32xf32> -> vector<1x128x32xf32>
    %11 = arith.truncf %8 : vector<1x8x32xf32> to vector<1x8x32xbf16>
    %12 = arith.truncf %10 : vector<1x128x32xf32> to vector<1x128x32xbf16>
    "tpu.trace_start"() <{level = 10 : i32, message = "bnd,bmd->bnm"}> : () -> ()
    %cst_6 = arith.constant dense<0.000000e+00> : vector<1x8x128xf32>
    %13 = tpu.matmul %11, %12, %cst_6 {dimension_numbers = #tpu.dot_dimension_numbers<[2], [2], [1], [1], [0, 0, 0, 1, 1, 1], [0], [0]>} : vector<1x8x32xbf16>, vector<1x128x32xbf16>, vector<1x8x128xf32> -> vector<1x8x128xf32>
    "tpu.trace_stop"() : () -> ()
    %c0_7 = arith.constant 0 : index
    %c0_8 = arith.constant 0 : index
    %c0_9 = arith.constant 0 : index
    %14 = vector.load %arg3[%c0_7, %c0_8, %c0_9] : memref<1x8x128xf32, #tpu.memory_space<vmem>>, vector<1x8x128xf32>
    tpu.vector_store %arg3[%c0_7, %c0_8, %c0_9], %13 {strides = array<i32>} : memref<1x8x128xf32, #tpu.memory_space<vmem>>, vector<1x8x128xf32>,
    return
  }
  func.func @transform_0(%arg0: i32) -> (i32, i32, i32) {
    %c0_i32 = arith.constant 0 : i32
    %c0_i32_0 = arith.constant 0 : i32
    %c0_i32_1 = arith.constant 0 : i32
    return %arg0, %c0_i32, %c0_i32_0 : i32, i32, i32
  }
  func.func @transform_1(%arg0: i32) -> (i32, i32, i32) {
    %c0_i32 = arith.constant 0 : i32
    %c0_i32_0 = arith.constant 0 : i32
    %c0_i32_1 = arith.constant 0 : i32
    return %arg0, %c0_i32, %c0_i32_0 : i32, i32, i32
  }
  func.func @transform_2(%arg0: i32) -> (i32, i32, i32) {
    %c0_i32 = arith.constant 0 : i32
    %c0_i32_0 = arith.constant 0 : i32
    %c0_i32_1 = arith.constant 0 : i32
    return %arg0, %c0_i32, %c0_i32_0 : i32, i32, i32
  }
}

</mosaic_0001>

<bundles_post_ra>
// kernel: tpu_custom_call.1
= control target key start
LH: loop header
LB: loop body
LE: loop exit
PB: predicated region body
PF: predicated region fallthrough
CT: control target
= control target key end

     0   :  { %7 = vsyncpa [#allocation3], 0  ;;  %s527_s0 = inlined_call_operand.vmem [shape: f32[2,8,32], index: 0, kind: input, shape index: {}]   ;;  %s528_s1 = inlined_call_operand.vmem [shape: f32[2,8,1], index: 1, kind: input, shape index: {}]   ;;  %s529_s2 = inlined_call_operand.hbm [shape: f32[2,8,128], index: 2, kind: output, shape index: {}]  }
   0x1   :  { %9 = vsyncpa [#allocation3 + $0x1], 0  ;;  %s435_s9 = smov 0   ;;  %s437_s10 = smov 0  }
   0x2   :  { %s439_s11 = smov 0   ;;  %s441_s12 = smov 0  }
   0x3 LB: > { %s456_s13 = sadd.s32 4294967295, %s416_s12   ;;  %s298_s14 = sadd.s32 4294967294, %s416_s12   ;;  %s416_s12 = sphi %s441_s12, %s535_s12   ;;  %s412_s11 = sphi %s439_s11, %s534_s11   ;;  %s408_s10 = sphi %s437_s10, %s533_s10   ;;  %s404_s9 = sphi %s435_s9, %s532_s9  }
   0x4   : > { %s460_s15 = sadd.s32 1, %s416_s12   ;;  %s74_s16 = sadd.s32 1, %s412_s11 }
   0x5   : > { %s71_s17 = ssub.s32 %s416_s12, %s460_s15  ;;  %p84_p0 = scmp.ne.s32.totalorder %s412_s11, %s408_s10 }
   0x6   : > { %p72_p1 = scmp.eq.s32.totalorder %s71_s17, 0  ;;  %p85_p2 = scmp.eq.s32.totalorder %s456_s13, 1 }
   0x7   : > { %p90_p3 = scmp.ne.s32.totalorder %s408_s10, %s404_s9  ;;  %p91_p4 = scmp.eq.s32.totalorder %s298_s14, 1 }
   0x8   : > { %s471_s18 = scalar_select %p72_p1, %s412_s11, %s74_s16  }
   0x9   : > { %p473_p5 = por %p85_p2, %p84_p0  ;;  %p477_p6 = por %p91_p4, %p90_p3 }
   0xa   : > { %p301_p7 = scmp.ge.s32.totalorder %s416_s12, 1  ;;  %p123_p8 = scmp.lt.s32.totalorder %s416_s12, 3 }
   0xc   : > { %p124_p9 = pnand %p301_p7, %p123_p8 }
   0xd   : > { %p148_p10 = scmp.lt.s32.totalorder (!%p124_p9), %s456_s13, 1  ;;  %s145_s29 = sand.u32 (!%p124_p9), 1, %s408_s10  }
   0xe   : > { %127 = sbr.rel (%p124_p9) target bundleno = 428 (0x1ac), region = 28  ;;  %s307_s30 = sshll.u32 (!%p124_p9), %s456_s13, 3 }
   0xf   : > { %s302_s3 = sshll.u32 (!%p124_p9), %s145_s29, 3  ;;  %s222_s6 = scalar_lea.hbm (!%p124_p9), %s529_s2, %s307_s30 }
  0x10   : > { %s147_s7 = scalar_lea.vmem (!%p124_p9), [#allocation2], %s302_s3  ;;  %s226_s14 = sshll.u32 (!%p124_p9), %s222_s6, 4  ;;  %s227_s14 = int_to_ptr.hbm [resolvable:$true] %s226_s14 }
  0x11   : > { %s224_s8 = sshll.u32 (!%p124_p9), %s147_s7, 4  ;;  %s212_s16 = scalar_lea.sflag (!%p124_p9), [#allocation3], %s145_s29  ;;  %s225_s8 = int_to_ptr.vmem [resolvable:$true] %s224_s8 }
  0x12   : > { %s368_s17 = sshra.s32 (!%p124_p9), %s227_s14, 4  ;;  %s374_s23 = scalar_lea.hbm (!%p124_p9), %s529_s2, 16  ;;  %s369_s17 = int_to_ptr.hbm [resolvable:$true] %s368_s17 }
  0x13   : > { %v418_v0 = vmov 0.0|0.0   ;;  %s149_s21 = scalar_select %p148_p10, %s456_s13, 1  ;;  %vm159_vm0 = vcmask 261120   ;;  %v419_v7 = vmov 0  }
  0x14   : > { %v185_v1 = vunpack.c.l.b16 %v418_v0  ;;  %351 = vset.pattern.permute.xlu0 %v419_v7  ;;  %p375_p0 = scmp.lt.s32.totalorder %s369_s17, %s529_s2 }
  0x15   : > { %s303_s22 = sshll.u32 %s149_s21, 3  ;;  %s370_s21 = scalar_lea.hbm %s369_s17, 8 }
  0x16   : > { %v187_v2 = vpack.c.b16 %v185_v1, %v185_v1  ;;  %s151_s25 = scalar_lea.vmem %s527_s0, %s303_s22  ;;  %s155_s28 = scalar_lea.vmem %s528_s1, %s303_s22 }
  0x17   : > { %v156_v4 = vld [vmem:[%s151_s25] sm:$0xff]  ;;  %p371_p11 = scmp.ne.s32.totalorder %s369_s17, %s370_s21  ;;  %p376_p1 = scmp.lt.s32.totalorder %s374_s23, %s370_s21 }
  0x18   : > { %v195_v3 = vsel %vm159_vm0, %v187_v2, 0  ;;  %v158_v5 = vmul.f32 %v156_v4, %v156_v4  ;;  %v157_v15 = vld [vmem:[%s155_s28] sm:$0xff] }
  0x19   : > { %197 = vmatpush.bf16.xpose.msra.mxu0 %v195_v3  ;;  %p372_p12 = pnand %p371_p11, %p473_p5  ;;  %p377_p2 = por %p376_p1, %p375_p0 }
  0x1a   : > { %v160_v6 = vsel %vm159_vm0, %v158_v5, 0.0 }
  0x1b   : > { %161 = vadd.xlane.f32.xlu0 %v160_v6  ;;  %p373_p13 = pneg %p372_p12 }
  0x1d   : > { %p378_p3 = pnand %p377_p2, %p373_p13 }
  0x21   : > { %198 = vmatpush.bf16.xpose.msra.mxu0 %v195_v3 }
  0x29   : > { %199 = vmatpush.bf16.xpose.msra.mxu0 %v195_v3 }
  0x31   : > { %200 = vmatpush.bf16.xpose.msra.mxu0 %v195_v3 }
  0x39   : > { %201 = vmatpush.bf16.xpose.msra.mxu0 %v195_v3 }
  0x41   : > { %202 = vmatpush.bf16.xpose.msra.mxu0 %v195_v3 }
  0x49   : > { %203 = vmatpush.bf16.xpose.msra.mxu0 %v195_v3 }
  0x8e   : > { %v162_v8 = vpop.xlane.xlu0 %161 }
  0x8f   : > { %352 = vrsqrt.f32 %v162_v8  ;;  %vm169_vm2 = vweird.f32 %v162_v8 }
  0x95   : > { %v353_v9 = vpop.eup %352 }
  0x96   : > { %v164_v10 = vmul.f32 %v353_v9, %v162_v8  ;;  %vm170_vm1 = vweird.f32 %v353_v9 }
  0x97   : > { %vm171_vm3 = vmor %vm169_vm2, %vm170_vm1 }
  0x98   : > { %v165_v11 = vmul.f32 %v353_v9, %v164_v10 }
  0x9a   : > { %v166_v12 = vmul.f32 0.5, %v165_v11 }
  0x9c   : > { %v167_v13 = vsub.f32 1.5, %v166_v12 }
  0x9e   : > { %v168_v14 = vmul.f32 %v353_v9, %v167_v13 }
  0xa0   : > { %v172_v16 = vsel %vm171_vm3, %v353_v9, %v168_v14 }
  0xa1   : > { %v173_v17 = vmul.f32 %v172_v16, %v157_v15 }
  0xa3   : > { %176 = vperm.xlu0 %351, %v173_v17  }
 0x115   : > { %v177_v18 = vpop.permute.xlu0 %176 }
 0x116   : > { %v179_v19 = vmul.f32 %v177_v18, %v156_v4 }
 0x118   : > { %v180_v20 = vpack.c.bf16 %v179_v19, %v179_v19 }
 0x11a   : > { %v184_v21 = vunpack.c.l.b16 %v180_v20 }
 0x11c   : > { %v186_v22 = vpack.c.b16 %v185_v1, %v184_v21 }
 0x11e   : > { %v192_v23 = vsel %vm159_vm0, %v186_v22, 0 }
 0x11f   : > { %204 = vmatpush.bf16.xpose.msra.mxu0 %v192_v23 }
 0x126   : > { %305 = vmatmul.msk.bf16.vlgmr.msra.gmra.mxu0 %vm159_vm0, %v180_v20 }
 0x1a3   : > { %v206_v24 = vpop.f32.mrf.mxu0 }
 0x1a4   : > { %210 = vst [vmem:[%s147_s7] sm:$0xff] %v206_v24 }
 0x1a5   : > { %381 = shalt.err (!%p378_p3)
}
 0x1a6   : > { %310 = dma.vmem_to_hbm [thread:$0]  (%p473_p5), %s225_s8, 128, %s227_s14, %s212_s16  }
 0x1ab   : > { %v208_v25 = vpop.f32.mrf.mxu0 }
 0x1ac PF: > { %p316_p4 = scmp.ge.s32.totalorder %s416_s12, 2  ;;  %s238_s26 = sand.u32 1, %s404_s9  }
 0x1ad   : > { %s239_s27 = scalar_lea.sflag [#allocation3], %s238_s26 }
 0x1ae   : > { %p313_p7 = pnand %p316_p4, %p477_p6 }
 0x1b0   : > { %p314_p8 = pneg %p313_p7 }
 0x1b2   : > { %399 = dma.done.wait (%p314_p8), %s239_s27, 128  }
 0x1b3   : > { %401 = vsyncadd (%p314_p8), %s239_s27, 4294967168  ;;  %p12_p9 = scmp.ge.s32.totalorder %s460_s15, 4   ;;  %s532_s9 = smov %s408_s10 }
 0x1b4   : > { %s533_s10 = smov %s412_s11  ;;  %s534_s11 = smov %s471_s18 }
 0x1b5   : > { %s535_s12 = smov %s460_s15  ;;  %14 = sbr.rel (!%p12_p9) target bundleno = 3 (0x3), region = 66 }
 0x1ba   :  { %245 = vsyncpa [#allocation3], 1 }
 0x1bb   :  { %247 = vsyncpa [#allocation3 + $0x1], 1 }

</bundles_post_ra>
